<compile_context>
chip_gen: v6e
topology: v6e:2x2x1
jax: 0.10.0
libtpu: 0.0.40
codegen_flags: <defaults>
</compile_context>

<pallas_src>
import jax
import jax.numpy as jnp
from jax.experimental import pallas as pl
from jax.experimental.pallas import tpu as pltpu


# ----------------------------- kernels --------------------------------------


def _make_se_kernel(inv_hw):
    """Single-pass kernel; each block = (Bt, C, HW) spanning the full spatial extent."""

    def se_kernel(x_ref, w1t_ref, b1_ref, w2t_ref, b2_ref, o_ref):
        x = x_ref[...]                                               # (Bt, C, HW)
        # Squeeze: mean over the spatial (lane) axis, accumulated in f32.
        pooled = jnp.sum(x, axis=-1, dtype=jnp.float32) * inv_hw     # (Bt, C)
        # FC1 + ReLU: (Bt, C) @ (C, Cr)
        h = jnp.dot(pooled, w1t_ref[...], preferred_element_type=jnp.float32) + b1_ref[...]
        h = jnp.maximum(h, 0.0)
        # FC2 + sigmoid: (Bt, Cr) @ (Cr, C)
        logits = jnp.dot(h, w2t_ref[...], preferred_element_type=jnp.float32) + b2_ref[...]
        gate = pl.reciprocal(1.0 + jnp.exp(-logits), approx=False)   # (Bt, C) f32
        # Excitation: f32 gate broadcast over the spatial (lane) axis; cast only
        # in the store (no pre-quantization of the gate for bf16 activations).
        o_ref[...] = (x * gate[:, :, None]).astype(o_ref.dtype)

    return se_kernel


def _make_gate_kernel(inv_hw):
    """Two-pass variant, pass 1: accumulate the pool over HW tiles, emit the gate."""

    def gate_kernel(x_ref, w1t_ref, b1_ref, w2t_ref, b2_ref, gate_ref, pool_acc):
        hw_i = pl.program_id(1)

        @pl.when(hw_i == 0)
        def _():
            pool_acc[...] = jnp.zeros_like(pool_acc)

        pool_acc[...] += jnp.sum(x_ref[...], axis=-1, dtype=jnp.float32)

        @pl.when(hw_i == pl.num_programs(1) - 1)
        def _():
            pooled = pool_acc[...] * inv_hw                          # global 1/(H*W)
            h = jnp.dot(pooled, w1t_ref[...], preferred_element_type=jnp.float32) + b1_ref[...]
            h = jnp.maximum(h, 0.0)
            logits = jnp.dot(h, w2t_ref[...], preferred_element_type=jnp.float32) + b2_ref[...]
            gate_ref[...] = pl.reciprocal(1.0 + jnp.exp(-logits), approx=False)[:, :, None]

    return gate_kernel


def _scale_kernel(x_ref, gate_ref, o_ref):
    """Two-pass variant, pass 2: stream HW tiles and apply the per-channel gate."""
    o_ref[...] = (x_ref[...] * gate_ref[...]).astype(o_ref.dtype)


# ----------------------------- sizing helpers --------------------------------


def _vmem_config():
    """(budget_bytes, vmem_limit_bytes, has_two_tensorcores) for this chip."""
    cap = None
    try:
        cap = getattr(pltpu.get_tpu_info(), "vmem_capacity_bytes", None)
    except Exception:
        cap = None
    if cap is None:
        cap = 64 << 20                       # conservative: assume v7x-sized VMEM
    if cap >= (96 << 20):                    # v5e / v6e: 128 MiB VMEM, 1 TensorCore
        return 88 << 20, 104 << 20, False
    return 36 << 20, 48 << 20, True          # v7x-class: 64 MiB per TC, 2 TensorCores


def _choose_batch_tile(B, per_image_bytes, budget_bytes, two_cores):
    max_bt = max(1, int(budget_bytes // max(1, per_image_bytes)))
    if two_cores and B >= 2:
        # Keep >= 2 grid steps so both v7x TensorCores get work.  On single-TC
        # chips (v5e/v6e) this cap is skipped: take the largest tile that fits.
        max_bt = min(max_bt, max(1, B // 2))
    bt = 1
    for d in range(1, B + 1):
        if B % d == 0 and d <= max_bt:
            bt = d
    return bt


def _choose_hw_tile(HW, per_col_bytes, budget_bytes):
    """Largest divisor of HW that is a multiple of 128 and fits the budget."""
    max_thw = max(128, (int(budget_bytes // max(1, per_col_bytes)) // 128) * 128)
    t = min(max_thw, (HW // 128) * 128)
    while t >= 128:
        if HW % t == 0:
            return t
        t -= 128
    return None


# ----------------------------- wrapper ---------------------------------------


def squeeze_excitation(x, w1, b1, w2, b2, *, vmem_budget_bytes=None, vmem_limit_bytes=None):
    """SE forward.  x: (B, C, H, W) NCHW.  w1: (Cr, C), b1: (Cr,), w2: (C, Cr), b2: (C,)."""
    B, C, H, W = x.shape
    HW = H * W
    Cr = w1.shape[0]

    auto_budget, auto_limit, two_cores = _vmem_config()
    budget = auto_budget if vmem_budget_bytes is None else vmem_budget_bytes
    limit = auto_limit if vmem_limit_bytes is None else vmem_limit_bytes

    # Native NCHW layout: C on sublane, HW on lane.  Reshape is free (contiguous).
    x3 = x.reshape(B, C, HW)
    w1t = jnp.transpose(w1).astype(jnp.float32)   # (C, Cr)
    w2t = jnp.transpose(w2).astype(jnp.float32)   # (Cr, C)
    b1r = b1.reshape(1, Cr).astype(jnp.float32)
    b2r = b2.reshape(1, C).astype(jnp.float32)

    itemsize = jnp.dtype(x.dtype).itemsize
    # 2x double-buffered input + 2x double-buffered output + one f32 temp slab of
    # headroom (in case the f32 reduce / gate-multiply temporaries are not fused).
    per_image_bytes = 4 * C * HW * itemsize + C * HW * 4

    def _params(sem):
        return pltpu.CompilerParams(dimension_semantics=sem, vmem_limit_bytes=limit)

    if per_image_bytes <= budget:
        # ---- single pass: each grid step owns whole images ------------------
        Bt = _choose_batch_tile(B, per_image_bytes, budget, two_cores)
        # TODO(synk): with B == 1 on a two-TensorCore chip (v7x) this grid has a
        # single step and one core idles; an HW-split core_map pass would fix it.
        out3 = pl.pallas_call(
            _make_se_kernel(1.0 / HW),
            out_shape=jax.ShapeDtypeStruct((B, C, HW), x.dtype),
            grid=(B // Bt,),
            in_specs=[
                pl.BlockSpec((Bt, C, HW), lambda b: (b, 0, 0)),   # activation slab
                pl.BlockSpec((C, Cr), lambda b: (0, 0)),          # fc1 weight^T
                pl.BlockSpec((1, Cr), lambda b: (0, 0)),          # fc1 bias
                pl.BlockSpec((Cr, C), lambda b: (0, 0)),          # fc2 weight^T
                pl.BlockSpec((1, C), lambda b: (0, 0)),           # fc2 bias
            ],
            out_specs=pl.BlockSpec((Bt, C, HW), lambda b: (b, 0, 0)),
            compiler_params=_params(("parallel",)),
        )(x3, w1t, b1r, w2t, b2r)
        return out3.reshape(B, C, H, W)

    # ---- two passes: a single image slab exceeds the VMEM budget ------------
    per_col_bytes = C * (4 * itemsize + 4)
    Thw = _choose_hw_tile(HW, per_col_bytes, budget)
    if Thw is None:
        # TODO(synk): HW too large for one block yet not tileable to a multiple of
        # 128; fall back to plain XLA for this (rare) shape.
        pooled = jnp.mean(x3.astype(jnp.float32), axis=-1)
        h = jax.nn.relu(pooled @ w1t + b1r)
        gate = jax.nn.sigmoid(h @ w2t + b2r)
        return (x3 * gate[:, :, None]).astype(x.dtype).reshape(B, C, H, W)

    Bt = 1
    nb, nh = B // Bt, HW // Thw

    # Pass 1: accumulate the pool over HW tiles, compute the (B, C, 1) f32 gate.
    gate = pl.pallas_call(
        _make_gate_kernel(1.0 / HW),
        out_shape=jax.ShapeDtypeStruct((B, C, 1), jnp.float32),
        grid=(nb, nh),
        in_specs=[
            pl.BlockSpec((Bt, C, Thw), lambda b, h: (b, 0, h)),
            pl.BlockSpec((C, Cr), lambda b, h: (0, 0)),
            pl.BlockSpec((1, Cr), lambda b, h: (0, 0)),
            pl.BlockSpec((Cr, C), lambda b, h: (0, 0)),
            pl.BlockSpec((1, C), lambda b, h: (0, 0)),
        ],
        out_specs=pl.BlockSpec((Bt, C, 1), lambda b, h: (b, 0, 0)),
        scratch_shapes=[pltpu.VMEM((Bt, C), jnp.float32)],
        compiler_params=_params(("parallel", "arbitrary")),
    )(x3, w1t, b1r, w2t, b2r)

    # Pass 2: re-stream HW tiles and scale; both axes parallel (v7x megacore).
    out3 = pl.pallas_call(
        _scale_kernel,
        out_shape=jax.ShapeDtypeStruct((B, C, HW), x.dtype),
        grid=(nb, nh),
        in_specs=[
            pl.BlockSpec((Bt, C, Thw), lambda b, h: (b, 0, h)),
            pl.BlockSpec((Bt, C, 1), lambda b, h: (b, 0, 0)),
        ],
        out_specs=pl.BlockSpec((Bt, C, Thw), lambda b, h: (b, 0, h)),
        compiler_params=_params(("parallel", "parallel")),
    )(x3, gate)
    return out3.reshape(B, C, H, W)


# ----------------------------- reference & test ------------------------------


def reference(x, w1, b1, w2, b2):
    xf = x.astype(jnp.float32)
    pooled = jnp.mean(xf, axis=(2, 3))                               # (B, C)
    h = jax.nn.relu(pooled @ w1.astype(jnp.float32).T + b1.astype(jnp.float32))
    s = jax.nn.sigmoid(h @ w2.astype(jnp.float32).T + b2.astype(jnp.float32))
    return xf * s[:, :, None, None]


def _make_inputs(key, B, C, H, W, reduction_ratio, dtype):
    Cr = max(1, C // reduction_ratio)
    kx, kw1, kb1, kw2, kb2 = jax.random.split(key, 5)
    x = jax.random.normal(kx, (B, C, H, W), jnp.float32).astype(dtype)
    lim1 = 1.0 / (C ** 0.5)
    lim2 = 1.0 / (Cr ** 0.5)
    w1 = jax.random.uniform(kw1, (Cr, C), jnp.float32, -lim1, lim1)
    b1 = jax.random.uniform(kb1, (Cr,), jnp.float32, -lim1, lim1)
    w2 = jax.random.uniform(kw2, (C, Cr), jnp.float32, -lim2, lim2)
    b2 = jax.random.uniform(kb2, (C,), jnp.float32, -lim2, lim2)
    return x, w1, b1, w2, b2


if __name__ == "__main__":
    key = jax.random.PRNGKey(0)
    k1, k2, k3 = jax.random.split(key, 3)

    # 1) Small SE layer, f32, single-pass path.
    x, w1, b1, w2, b2 = _make_inputs(k1, 2, 32, 16, 16, 16, jnp.float32)
    out = jax.block_until_ready(squeeze_excitation(x, w1, b1, w2, b2))
    ref = reference(x, w1, b1, w2, b2)
    assert out.shape == x.shape
    assert jnp.allclose(out.astype(jnp.float32), ref, atol=2e-5, rtol=2e-5), "single-pass mismatch"

    # 2) Same inputs, tiny budget forces the two-pass (HW-tiled) fallback path.
    out2 = jax.block_until_ready(
        squeeze_excitation(x, w1, b1, w2, b2, vmem_budget_bytes=1 << 16))
    assert jnp.allclose(out2.astype(jnp.float32), ref, atol=2e-5, rtol=2e-5), "two-pass mismatch"

    # 3) Wider-channel layer, f32.
    x3, w13, b13, w23, b23 = _make_inputs(k2, 2, 128, 8, 8, 16, jnp.float32)
    out3 = jax.block_until_ready(squeeze_excitation(x3, w13, b13, w23, b23))
    ref3 = reference(x3, w13, b13, w23, b23)
    assert jnp.allclose(out3.astype(jnp.float32), ref3, atol=2e-5, rtol=2e-5), "C=128 mismatch"

    # 4) bf16 activation path (f32 gate, cast only in the store).
    xb, w1b, b1b, w2b, b2b = _make_inputs(k3, 2, 32, 16, 16, 16, jnp.bfloat16)
    outb = jax.block_until_ready(squeeze_excitation(xb, w1b, b1b, w2b, b2b))
    refb = reference(xb, w1b, b1b, w2b, b2b)
    assert outb.dtype == jnp.bfloat16
    assert jnp.allclose(outb.astype(jnp.float32), refb, atol=5e-2, rtol=5e-2), "bf16 mismatch"

    print("KERNEL_OK")
</pallas_src>

<mosaic_0001>
module attributes {stable_mosaic.version = 11 : i64} {
  func.func @se_kernel(%arg0: i32, %arg1: memref<1x32x256xf32, #tpu.memory_space<vmem>>, %arg2: memref<32x2xf32, #tpu.memory_space<vmem>>, %arg3: memref<1x2xf32, #tpu.memory_space<vmem>>, %arg4: memref<2x32xf32, #tpu.memory_space<vmem>>, %arg5: memref<1x32xf32, #tpu.memory_space<vmem>>, %arg6: memref<1x32x256xf32, #tpu.memory_space<vmem>>) attributes {dimension_semantics = [#tpu.dimension_semantics<parallel>], iteration_bounds = array<i64: 2>, scalar_prefetch = 0 : i64, scratch_operands = 0 : i64, tpu.core_type = #tpu.core_type<tc>, window_params = [{transform_indices = @transform_0, window_bounds = array<i64: 1, 32, 256>}, {pipeline_mode = #tpu.pipeline_mode<synchronous>, transform_indices = @transform_1, window_bounds = array<i64: 32, 2>}, {pipeline_mode = #tpu.pipeline_mode<synchronous>, transform_indices = @transform_2, window_bounds = array<i64: 1, 2>}, {pipeline_mode = #tpu.pipeline_mode<synchronous>, transform_indices = @transform_3, window_bounds = array<i64: 2, 32>}, {pipeline_mode = #tpu.pipeline_mode<synchronous>, transform_indices = @transform_4, window_bounds = array<i64: 1, 32>}, {transform_indices = @transform_5, window_bounds = array<i64: 1, 32, 256>}]} {
    %c0 = arith.constant 0 : index
    %c0_0 = arith.constant 0 : index
    %c0_1 = arith.constant 0 : index
    %0 = vector.load %arg1[%c0, %c0_0, %c0_1] : memref<1x32x256xf32, #tpu.memory_space<vmem>>, vector<1x32x256xf32>
    %cst = arith.constant dense<0.000000e+00> : vector<1x32xf32>
    %1 = vector.multi_reduction <add>, %0, %cst [2] : vector<1x32x256xf32> to vector<1x32xf32>
    %cst_2 = arith.constant 3.906250e-03 : f32
    %2 = vector.broadcast %cst_2 : f32 to vector<1x32xf32>
    %3 = arith.mulf %1, %2 : vector<1x32xf32>
    %c0_3 = arith.constant 0 : index
    %c0_4 = arith.constant 0 : index
    %4 = vector.load %arg2[%c0_3, %c0_4] : memref<32x2xf32, #tpu.memory_space<vmem>>, vector<32x2xf32>
    %cst_5 = arith.constant dense<0.000000e+00> : vector<1x2xf32>
    %5 = tpu.matmul %3, %4, %cst_5 {dimension_numbers = #tpu.dot_dimension_numbers<[1], [0], [0], [1], [0, 0, 1, 1], [], []>} : vector<1x32xf32>, vector<32x2xf32>, vector<1x2xf32> -> vector<1x2xf32>
    %c0_6 = arith.constant 0 : index
    %c0_7 = arith.constant 0 : index
    %6 = vector.load %arg3[%c0_6, %c0_7] : memref<1x2xf32, #tpu.memory_space<vmem>>, vector<1x2xf32>
    %7 = arith.addf %5, %6 : vector<1x2xf32>
    %cst_8 = arith.constant 0.000000e+00 : f32
    %8 = vector.broadcast %cst_8 : f32 to vector<1x2xf32>
    %9 = arith.maximumf %7, %8 : vector<1x2xf32>
    %c0_9 = arith.constant 0 : index
    %c0_10 = arith.constant 0 : index
    %10 = vector.load %arg4[%c0_9, %c0_10] : memref<2x32xf32, #tpu.memory_space<vmem>>, vector<2x32xf32>
    %cst_11 = arith.constant dense<0.000000e+00> : vector<1x32xf32>
    %11 = tpu.matmul %9, %10, %cst_11 {dimension_numbers = #tpu.dot_dimension_numbers<[1], [0], [0], [1], [0, 0, 1, 1], [], []>} : vector<1x2xf32>, vector<2x32xf32>, vector<1x32xf32> -> vector<1x32xf32>
    %c0_12 = arith.constant 0 : index
    %c0_13 = arith.constant 0 : index
    %12 = vector.load %arg5[%c0_12, %c0_13] : memref<1x32xf32, #tpu.memory_space<vmem>>, vector<1x32xf32>
    %13 = arith.addf %11, %12 : vector<1x32xf32>
    %cst_14 = arith.constant 0.000000e+00 : f32
    %14 = vector.broadcast %cst_14 : f32 to vector<1x32xf32>
    %15 = arith.subf %14, %13 : vector<1x32xf32>
    %16 = math.exp %15 : vector<1x32xf32>
    %cst_15 = arith.constant 1.000000e+00 : f32
    %17 = vector.broadcast %cst_15 : f32 to vector<1x32xf32>
    %18 = arith.addf %17, %16 : vector<1x32xf32>
    %19 = tpu.reciprocal %18 : vector<1x32xf32> -> vector<1x32xf32>
    %20 = vector.shape_cast %19 : vector<1x32xf32> to vector<1x32x1xf32>
    %21 = vector.broadcast %20 : vector<1x32x1xf32> to vector<1x32x256xf32>
    %22 = arith.mulf %0, %21 : vector<1x32x256xf32>
    %c0_16 = arith.constant 0 : index
    %c0_17 = arith.constant 0 : index
    %c0_18 = arith.constant 0 : index
    %23 = vector.load %arg6[%c0_16, %c0_17, %c0_18] : memref<1x32x256xf32, #tpu.memory_space<vmem>>, vector<1x32x256xf32>
    tpu.vector_store %arg6[%c0_16, %c0_17, %c0_18], %22 {strides = array<i32>} : memref<1x32x256xf32, #tpu.memory_space<vmem>>, vector<1x32x256xf32>,
    return
  }
  func.func @transform_0(%arg0: i32) -> (i32, i32, i32) {
    %c0_i32 = arith.constant 0 : i32
    %c0_i32_0 = arith.constant 0 : i32
    %c0_i32_1 = arith.constant 0 : i32
    return %arg0, %c0_i32, %c0_i32_0 : i32, i32, i32
  }
  func.func @transform_1(%arg0: i32) -> (i32, i32) {
    %c0_i32 = arith.constant 0 : i32
    %c0_i32_0 = arith.constant 0 : i32
    %c0_i32_1 = arith.constant 0 : i32
    return %c0_i32, %c0_i32_0 : i32, i32
  }
  func.func @transform_2(%arg0: i32) -> (i32, i32) {
    %c0_i32 = arith.constant 0 : i32
    %c0_i32_0 = arith.constant 0 : i32
    %c0_i32_1 = arith.constant 0 : i32
    return %c0_i32, %c0_i32_0 : i32, i32
  }
  func.func @transform_3(%arg0: i32) -> (i32, i32) {
    %c0_i32 = arith.constant 0 : i32
    %c0_i32_0 = arith.constant 0 : i32
    %c0_i32_1 = arith.constant 0 : i32
    return %c0_i32, %c0_i32_0 : i32, i32
  }
  func.func @transform_4(%arg0: i32) -> (i32, i32) {
    %c0_i32 = arith.constant 0 : i32
    %c0_i32_0 = arith.constant 0 : i32
    %c0_i32_1 = arith.constant 0 : i32
    return %c0_i32, %c0_i32_0 : i32, i32
  }
  func.func @transform_5(%arg0: i32) -> (i32, i32, i32) {
    %c0_i32 = arith.constant 0 : i32
    %c0_i32_0 = arith.constant 0 : i32
    %c0_i32_1 = arith.constant 0 : i32
    return %arg0, %c0_i32, %c0_i32_0 : i32, i32, i32
  }
}

</mosaic_0001>

<bundles_post_ra>
// kernel: tpu_custom_call.1
= control target key start
LH: loop header
LB: loop body
LE: loop exit
PB: predicated region body
PF: predicated region fallthrough
CT: control target
= control target key end

     0   :  { %10 = vsyncpa [#allocation3], 0  ;;  %s1025_s0 = inlined_call_operand.hbm [shape: f32[2,32,256], index: 0, kind: input, shape index: {}]   ;;  %s1026_s1 = inlined_call_operand.vmem [shape: f32[32,2], index: 1, kind: input, shape index: {}]   ;;  %s1027_s2 = inlined_call_operand.vmem [shape: f32[1,2], index: 2, kind: input, shape index: {}]   ;;  %s1028_s3 = inlined_call_operand.vmem [shape: f32[2,32], index: 3, kind: input, shape index: {}]   ;;  %s1029_s4 = inlined_call_operand.vmem [shape: f32[1,32], index: 4, kind: input, shape index: {}]   ;;  %s1030_s5 = inlined_call_operand.hbm [shape: f32[2,32,256], index: 5, kind: output, shape index: {}]  }
   0x1   :  { %12 = vsyncpa [#allocation3 + $0x1], 0 }
   0x2   :  { %13 = vsyncpa [#allocation4], 0 }
   0x3   :  { %15 = vsyncpa [#allocation4 + $0x1], 0  ;;  %s814_s18 = smov 0   ;;  %s816_s19 = smov 0  }
   0x4   :  { %s818_s20 = smov 0   ;;  %s820_s21 = smov 0  }
   0x5 LB: > { %s835_s22 = sadd.s32 4294967295, %s774_s21   ;;  %s584_s23 = sadd.s32 4294967294, %s774_s21   ;;  %s774_s21 = sphi %s820_s21, %s1045_s21   ;;  %s770_s20 = sphi %s818_s20, %s1044_s20   ;;  %s766_s19 = sphi %s816_s19, %s1043_s19   ;;  %s762_s18 = sphi %s814_s18, %s1042_s18  }
   0x6   : > { %s839_s24 = sadd.s32 1, %s774_s21   ;;  %s28_s25 = sadd.s32 1, %s770_s20 }
   0x7   : > { %s25_s26 = ssub.s32 %s774_s21, %s839_s24  ;;  %p35_p0 = scmp.ne.s32.totalorder %s770_s20, %s766_s19 }
   0x8   : > { %p26_p1 = scmp.eq.s32.totalorder %s25_s26, 0  ;;  %p36_p2 = scmp.eq.s32.totalorder %s774_s21, 0 }
   0x9   : > { %p41_p3 = scmp.ne.s32.totalorder %s766_s19, %s762_s18  ;;  %p42_p4 = scmp.eq.s32.totalorder %s835_s22, 0 }
   0xa   : > { %s851_s27 = scalar_select %p26_p1, %s770_s20, %s28_s25  }
   0xb   : > { %p853_p5 = por %p36_p2, %p35_p0  ;;  %p857_p6 = por %p42_p4, %p41_p3 }
   0xc   : > { %p149_p7 = scmp.eq.s32.totalorder %s835_s22, 1  ;;  %p155_p8 = scmp.eq.s32.totalorder %s584_s23, 1 }
   0xd   : > { %s1034_s29 = scalar_select %p857_p6, 1, 0 }
   0xe   : > { %p638_p10 = scmp.lt.s32.totalorder %s774_s21, 2  ;;  %p864_p11 = por %p149_p7, %p35_p0 }
   0xf   : > { %p868_p12 = por %p155_p8, %p41_p3  ;;  %s187_s7 = sand.u32 1, %s770_s20  }
  0x10   : > { %s1035_s30 = scalar_select %p864_p11, 1, 0 }
  0x11   : > { %s1036_s6 = scalar_select %p868_p12, 1, 0 }
  0x12   : > { %s601_s8 = sshll.u32 %s774_s21, 10  ;;  %s587_s9 = sshll.u32 %s187_s7, 6 }
  0x13   : > { %s877_s12 = scalar_lea.hbm %s1025_s0, %s601_s8  ;;  %s191_s13 = scalar_lea.vmem [#allocation2], %s587_s9 }
  0x14   : > { %s198_s14 = sshll.u32 %s191_s13, 4  ;;  %p881_p13 = pnand %p638_p10, %p853_p5  ;;  %s885_s14 = int_to_ptr.vmem [resolvable:$true] %s198_s14 }
  0x15   : > { %s887_s16 = scalar_lea.sflag [#allocation3], %s187_s7  ;;  %s682_s17 = scalar_lea.hbm %s877_s12, 1024 }
  0x16   : > { %p683_p0 = scmp.ne.s32.totalorder %s877_s12, %s682_s17  ;;  %p684_p1 = pneg %p881_p13 }
  0x17   : > { %s687_s26 = scalar_lea.hbm %s1025_s0, 2048  ;;  %p688_p4 = scmp.lt.s32.totalorder %s877_s12, %s1025_s0 }
  0x18   : > { %p685_p2 = pnand %p684_p1, %p683_p0  ;;  %p689_p5 = scmp.lt.s32.totalorder %s687_s26, %s682_s17 }
  0x1a   : > { %p686_p3 = pneg %p685_p2  ;;  %p690_p7 = por %p689_p5, %p688_p4 }
  0x1c   : > { %p691_p8 = pnand %p690_p7, %p686_p3 }
  0x1e   : > { %694 = shalt.err (!%p691_p8)
}
  0x1f   : > { %s695_s7 = scalar_lea.vmem %s885_s14, 1024  ;;  %s776_s9 = smov [#allocation2]  }
  0x20   : > { %p696_p10 = scmp.ne.s32.totalorder %s885_s14, %s695_s7  ;;  %s700_s10 = sshll.u32 %s776_s9, 4  ;;  %s701_s10 = int_to_ptr.vmem [resolvable:$false] %s700_s10 }
  0x21   : > { %s702_s11 = scalar_lea.vmem %s701_s10, 2048  ;;  %p703_p2 = scmp.lt.s32.totalorder %s885_s14, %s701_s10 }
  0x22   : > { %p698_p9 = pnand %p696_p10, %p684_p1  ;;  %p704_p12 = scmp.lt.s32.totalorder %s702_s11, %s695_s7 }
  0x24   : > { %p699_p0 = pneg %p698_p9  ;;  %p705_p11 = por %p704_p12, %p703_p2 }
  0x26   : > { %p706_p6 = pnand %p705_p11, %p699_p0 }
  0x28   : > { %709 = shalt.err (!%p706_p6)
}
  0x29   : > { %s777_s13 = smov 256   ;;  %s778_s17 = smov 16  }
  0x2a   : > { %633 = dma.hbm_to_vmem [thread:$0]  (!%p881_p13), %s877_s12, 1024, %s885_s14, %s887_s16, %s777_s13, %s777_s13, %s778_s17  }
  0x2b   : > { %p590_p9 = scmp.ge.s32.totalorder %s774_s21, 1  ;;  %p206_p1 = scmp.lt.s32.totalorder %s774_s21, 3 }
  0x2d   : > { %p207_p3 = pnand %p590_p9, %p206_p1 }
  0x2e   : > { %s911_s23 = sand.u32 (!%p207_p3), 1, %s766_s19   ;;  %p1038_p6 = scmp.ne.s32.totalorder (!%p207_p3), %s1034_s29, 0 }
  0x2f   : > { %210 = sbr.rel (%p207_p3) target bundleno = 772 (0x304), region = 40  ;;  %s591_s25 = sshll.u32 (!%p207_p3), %s911_s23, 6 }
  0x30   : > { %s213_s26 = scalar_lea.sflag (!%p207_p3), [#allocation3], %s911_s23  ;;  %s216_s28 = scalar_lea.vmem (!%p207_p3), [#allocation2], %s591_s25 }
  0x34   : > { %753 = dma.done.wait (%p1038_p6), %s213_s26, 1024  }
  0x35   : > { %755 = vsyncadd (%p1038_p6), %s213_s26, 4294966272  ;;  %v921_v0 = vld [vmem:[%s216_s28] sm:$0xff]  ;;  %v923_v1 = vld [vmem:[%s216_s28 + $0x8] sm:$0xff]  ;;  %v779_v12 = vmov 0.0   ;;  %vm780_vm0 = vmmov 0   ;;  %v276_v17 = vlaneseq  ;;  %vm287_vm1 = vcmask 130112  }
  0x36   : > { %v925_v2 = vld [vmem:[%s216_s28 + $0x20] sm:$0xff]  ;;  %v251_v3 = vadd.f32 %v923_v1, %v921_v0  ;;  %v929_v4 = vld [vmem:[%s216_s28 + $0x28] sm:$0xff]  ;;  %v931_v5 = vld [vmem:[%s216_s28 + $0x10] sm:$0xff]  ;;  %610 = vmatprep.subr.mxu0 %v779_v12  ;;  %621 = vmatprep.subr.mxu1 %v779_v12  ;;  %vm294_vm2 = vcmask 195712   ;;  %vm301_vm3 = vcmask 261312   ;;  %vm303_vm4 = vcmask 261120  }
  0x37   : > { %v933_v6 = vld [vmem:[%s216_s28 + $0x18] sm:$0xff]  ;;  %v257_v7 = vadd.f32 %v929_v4, %v925_v2  ;;  %v937_v8 = vld [vmem:[%s216_s28 + $0x30] sm:$0xff]  ;;  %v268_v15 = vld [vmem:[%s1026_s1 + $0x8] sm:$0xff]  ;;  %618 = vmatprep.mubr.msk.f32.mxu0 %vm780_vm0, %v779_v12  ;;  %623 = vmatprep.mubr.msk.f32.mxu1 %vm780_vm0, %v779_v12  ;;  %v277_v18 = vand.u32 127, %v276_v17  ;;  %v279_v19 = vshrl.u32 %v276_v17, 7  ;;  %vm383_vm5 = vcmask 1041408  }
  0x38   : > { %v939_v9 = vld [vmem:[%s216_s28 + $0x38] sm:$0xff]  ;;  %252 = vadd.xlane.f32.xlu0 %v251_v3  ;;  %v254_v10 = vadd.f32 %v933_v6, %v931_v5  ;;  %v269_v14 = vld [vmem:[%s1026_s1 + $0x10] sm:$0xff]  ;;  %v267_v16 = vld [vmem:[%s1026_s1] sm:$0xff]  ;;  %vm379_vm6 = vcmask 15360   ;;  %s242_s29 = scalar_lea.vmem [#allocation5], %s591_s25  ;;  %s602_s14 = sshll.u32 %s835_s22, 10 }
  0x39   : > { %258 = vadd.xlane.f32.xlu1 %v257_v7  ;;  %v260_v11 = vadd.f32 %v939_v9, %v937_v8  ;;  %v270_v13 = vld [vmem:[%s1026_s1 + $0x18] sm:$0xff]  ;;  %v282_v20 = vadd.s32 4294967288, %v277_v18  ;;  %v289_v22 = vadd.s32 4294967280, %v277_v18  ;;  %v296_v23 = vadd.s32 4294967272, %v277_v18  ;;  %v377_v42 = vld [vmem:[%s1028_s3] sm:$0x3]  ;;  %s980_s16 = scalar_lea.hbm %s1030_s5, %s602_s14 }
  0x3a   : > { %611 = vmatpush3.msra.mxu0 %v270_v13  ;;  %v280_v25 = vsub.s32 %v277_v18, %v279_v19  ;;  %622 = vmatpush3.msk.msra.mxu1 %vm383_vm5, %v377_v42  ;;  %v271_v43 = vld [vmem:[%s1027_s2] sm:$0x1]  ;;  %v464_v56 = vsub.s32 0, %v279_v19  ;;  %s511_s12 = sshll.u32 %s242_s29, 4  ;;  %s498_s22 = scalar_lea.sflag [#allocation4], %s911_s23  ;;  %s975_s12 = int_to_ptr.vmem [resolvable:$true] %s511_s12 }
  0x3b   : > { %612 = vmatprep.subr.mxu0 %v779_v12  ;;  %v285_v27 = vsub.s32 %v282_v20, %v279_v19  ;;  %v292_v28 = vsub.s32 %v289_v22, %v279_v19  ;;  %v299_v31 = vsub.s32 %v296_v23, %v279_v19  ;;  %v378_v48 = vld [vmem:[%s1029_s4] sm:$0x1]  ;;  %s710_s8 = scalar_lea.vmem %s975_s12, 1024  ;;  %p1039_p12 = scmp.ne.s32.totalorder %s1035_s30, 0 }
  0x3c   : > { %255 = vadd.xlane.f32.xlu0 %v254_v10  ;;  %613 = vmatpush3.msra.mxu0 %v269_v14  ;;  %p711_p11 = scmp.ne.s32.totalorder %s975_s12, %s710_s8  ;;  %s781_s7 = smov [#allocation5]  }
  0x3d   : > { %261 = vadd.xlane.f32.xlu1 %v260_v11  ;;  %614 = vmatprep.subr.mxu0 %v779_v12  ;;  %s714_s9 = sshll.u32 %s781_s7, 4  ;;  %s715_s9 = int_to_ptr.vmem [resolvable:$false] %s714_s9 }
  0x3e   : > { %615 = vmatpush3.msra.mxu0 %v268_v15  ;;  %p712_p13 = pnand %p711_p11, %p1039_p12  ;;  %s716_s10 = scalar_lea.vmem %s715_s9, 2048 }
  0x3f   : > { %616 = vmatprep.subr.mxu0 %v779_v12  ;;  %p717_p5 = scmp.lt.s32.totalorder %s975_s12, %s715_s9  ;;  %p718_p7 = scmp.lt.s32.totalorder %s716_s10, %s710_s8 }
  0x40   : > { %617 = vmatpush3.msra.mxu0 %v267_v16  ;;  %p713_p4 = pneg %p712_p13 }
  0x41   : > { %p719_p8 = por %p718_p7, %p717_p5 }
  0x43   : > { %p720_p10 = pnand %p719_p8, %p713_p4 }
  0xc1   : > { %v253_v21 = vpop.xlane.xlu0 %252 }
  0xc2   : > { %v259_v24 = vpop.xlane.xlu1 %258  ;;  %v263_v26 = vmul.f32 0.00390625, %v253_v21 }
  0xc3   : > { %v265_v29 = vmul.f32 0.00390625, %v259_v24 }
  0xc4   : > { %v281_v35 = vrot.slane %v263_v26, %v280_v25 }
  0xc5   : > { %v256_v30 = vpop.xlane.xlu0 %255  ;;  %v293_v37 = vrot.slane %v265_v29, %v292_v28 }
  0xc6   : > { %v264_v32 = vmul.f32 0.00390625, %v256_v30  ;;  %v262_v33 = vpop.xlane.xlu1 %261 }
  0xc7   : > { %v266_v34 = vmul.f32 0.00390625, %v262_v33 }
  0xc8   : > { %v286_v36 = vrot.slane %v264_v32, %v285_v27 }
  0xc9   : > { %v300_v38 = vrot.slane %v266_v34, %v299_v31 }
  0xca   : > { %v288_v39 = vsel %vm287_vm1, %v286_v36, %v281_v35 }
  0xcb   : > { %v295_v40 = vsel %vm294_vm2, %v293_v37, %v288_v39 }
  0xcc   : > { %v302_v41 = vsel %vm301_vm3, %v300_v38, %v295_v40 }
  0xcd   : > { %619 = vmatmul.mubr.msk.f32.vlgmr.msra.gmra.mxu0 %vm303_vm4, %v302_v41 }
 0x18d   : > { %v372_v44 = vpop.f32.mrf.mxu0 }
 0x18e   : > { %v373_v45 = vadd.f32 %v372_v44, %v271_v43 }
 0x18f   : > { %v620_v46 = vpop.f32.mrf.mxu0 }
 0x190   : > { %v376_v47 = vmax.f32 %v373_v45, 0.0 }
 0x192   : > { %624 = vmatmul.mubr.msk.f32.vlgmr.msra.gmra.mxu1 %vm379_vm6, %v376_v47 }
 0x252   : > { %v453_v49 = vpop.f32.mrf.mxu1 }
 0x253   : > { %v454_v50 = vadd.f32 %v453_v49, %v378_v48 }
 0x254   : > { %v625_v51 = vpop.f32.mrf.mxu1 }
 0x255   : > { %v457_v52 = vsub.f32 0.0, %v454_v50 }
 0x257   : > { %v458_v53 = vmul.f32 1.442695, %v457_v52 }
 0x259   : > { %678 = vpow2.f32 %v458_v53 }
 0x266   : > { %v679_v54 = vpop.eup %678 }
 0x267   : > { %v460_v55 = vadd.f32 1.0, %v679_v54 }
 0x269   : > { %680 = vrcp.f32 %v460_v55 }
 0x276   : > { %v681_v57 = vpop.eup %680 }
 0x277   : > { %v465_v58 = vrot.slane %v681_v57, %v464_v56 }
 0x279   : > { %471 = vbcast.lane.b32.xlu1 %v465_v58, 264  ;;  %467 = vbcast.lane.b32.xlu0 %v465_v58, 256 }
 0x27d   : > { %475 = vbcast.lane.b32.xlu1 %v465_v58, 272 }
 0x281   : > { %479 = vbcast.lane.b32.xlu1 %v465_v58, 280 }
 0x2eb   : > { %v472_v59 = vpop.permute.xlu1 %471  ;;  %v468_v60 = vpop.permute.xlu0 %467 }
 0x2ec   : > { %v483_v61 = vmul.f32 %v472_v59, %v931_v5  ;;  %v484_v62 = vmul.f32 %v472_v59, %v933_v6  ;;  %v481_v63 = vmul.f32 %v468_v60, %v921_v0  ;;  %v482_v3 = vmul.f32 %v468_v60, %v923_v1 }
 0x2ee   : > { %491 = vst [vmem:[%s242_s29 + $0x10] sm:$0xff] %v483_v61  ;;  %492 = vst [vmem:[%s242_s29 + $0x18] sm:$0xff] %v484_v62 }
 0x2ef   : > { %489 = vst [vmem:[%s242_s29] sm:$0xff] %v481_v63  ;;  %490 = vst [vmem:[%s242_s29 + $0x8] sm:$0xff] %v482_v3  ;;  %v476_v7 = vpop.permute.xlu1 %475 }
 0x2f0   : > { %v485_v10 = vmul.f32 %v476_v7, %v925_v2  ;;  %v486_v5 = vmul.f32 %v476_v7, %v929_v4 }
 0x2f2   : > { %493 = vst [vmem:[%s242_s29 + $0x20] sm:$0xff] %v485_v10  ;;  %494 = vst [vmem:[%s242_s29 + $0x28] sm:$0xff] %v486_v5 }
 0x2f3   : > { %v480_v0 = vpop.permute.xlu1 %479 }
 0x2f4   : > { %v487_v1 = vmul.f32 %v480_v0, %v937_v8  ;;  %v488_v2 = vmul.f32 %v480_v0, %v939_v9 }
 0x2f6   : > { %495 = vst [vmem:[%s242_s29 + $0x30] sm:$0xff] %v487_v1  ;;  %496 = vst [vmem:[%s242_s29 + $0x38] sm:$0xff] %v488_v2 }
 0x2f7   : > { %723 = shalt.err (!%p720_p10)
}
 0x2f8   : > { %s724_s11 = scalar_lea.hbm %s980_s16, 1024  ;;  %s728_s26 = scalar_lea.hbm %s1030_s5, 2048 }
 0x2f9   : > { %p725_p0 = scmp.ne.s32.totalorder %s980_s16, %s724_s11  ;;  %p729_p1 = scmp.lt.s32.totalorder %s980_s16, %s1030_s5 }
 0x2fa   : > { %p730_p3 = scmp.lt.s32.totalorder %s728_s26, %s724_s11 }
 0x2fb   : > { %p726_p2 = pnand %p725_p0, %p1039_p12 }
 0x2fc   : > { %p731_p6 = por %p730_p3, %p729_p1 }
 0x2fd   : > { %p727_p9 = pneg %p726_p2 }
 0x2ff   : > { %p732_p11 = pnand %p731_p6, %p727_p9 }
 0x301   : > { %735 = shalt.err (!%p732_p11)
}
 0x302   : > { %s782_s14 = smov 256   ;;  %s783_s25 = smov 16  }
 0x303   : > { %628 = dma.vmem_to_hbm [thread:$0]  (%p1039_p12), %s975_s12, 1024, %s980_s16, %s498_s22, %s782_s14, %s782_s14, %s783_s25  }
 0x304 PF: > { %s526_s15 = sand.u32 1, %s762_s18   ;;  %p1040_p13 = scmp.ne.s32.totalorder %s1036_s6, 0 }
 0x305   : > { %p1041_p4 = scmp.ge.s32.totalorder %s774_s21, 2  ;;  %s527_s8 = scalar_lea.sflag [#allocation4], %s526_s15 }
 0x307   : > { %p635_p5 = pnand %p1041_p4, %p1040_p13 }
 0x309   : > { %p636_p7 = pneg %p635_p5 }
 0x30b   : > { %757 = dma.done.wait (%p636_p7), %s527_s8, 1024  }
 0x30c   : > { %759 = vsyncadd (%p636_p7), %s527_s8, 4294966272  ;;  %p18_p8 = scmp.ge.s32.totalorder %s839_s24, 4   ;;  %s1042_s18 = smov %s766_s19 }
 0x30d   : > { %s1043_s19 = smov %s770_s20  ;;  %s1044_s20 = smov %s851_s27 }
 0x30e   : > { %s1045_s21 = smov %s839_s24  ;;  %20 = sbr.rel (!%p18_p8) target bundleno = 5 (0x5), region = 85 }
 0x313   :  { %532 = vsyncpa [#allocation3], 1 }
 0x314   :  { %534 = vsyncpa [#allocation3 + $0x1], 1 }
 0x315   :  { %535 = vsyncpa [#allocation4], 1 }
 0x316   :  { %537 = vsyncpa [#allocation4 + $0x1], 1 }

</bundles_post_ra>
